<compile_context>
chip_gen: v5e
topology: v5e:2x2
jax: 0.10.0
libtpu: 0.0.40
codegen_flags: <defaults>
</compile_context>

<pallas_src>
import jax
import jax.numpy as jnp
from jax.experimental import pallas as pl
from jax.experimental.pallas import tpu as pltpu

D_MODEL = 128
D_OUT = 3
XPAD = 16          # 9 features of x_flat, col 9 = t, cols 10..15 zero
OUT_W = 8          # d_out padded to 8 output lanes (full-array last dim)
TB_MAX = 512       # max batch tile (sublane axis)
LN_EPS = 1e-5      # nn.LayerNorm default


def _silu(x):
    return x * jax.nn.sigmoid(x)


def _layernorm_noaffine(h):
    # single pass: both reductions come straight from h (no serialized center)
    n = h.shape[-1]
    s1 = jnp.sum(h, axis=-1, keepdims=True)
    s2 = jnp.sum(h * h, axis=-1, keepdims=True)
    mu = s1 * (1.0 / n)
    var = s2 * (1.0 / n) - mu * mu
    return (h - mu) * jax.lax.rsqrt(var + LN_EPS)


def so3_mlp_kernel(x_ref, vecs_ref, w1x_ref, w1t_ref, w2_ref, w3_ref, out_ref):
    x = x_ref[...].astype(jnp.float32)          # (TB, XPAD); col 9 holds t
    vec = vecs_ref[...]                         # (8, d_model) f32 packed vectors
    wt = vec[0:1, :]                            # time_embed weight (1, d)
    bt = vec[1:2, :]                            # time_embed bias
    b1 = vec[2:3, :]                            # mlp[0] bias
    b2 = vec[3:4, :]                            # mlp[3] bias (LN1 affine folded in)
    b3 = vec[4:5, :OUT_W]                       # mlp[6] bias (LN2 affine folded in)

    # --- time_embed: Linear(1, d_model) + SiLU (K=1 matmul done as broadcast) ---
    t = x[:, 9:10]                              # (TB, 1), still f32
    te = t * wt + bt                            # (TB, d)
    te = _silu(te)

    # --- mlp[0]: Linear(9 + d_model, d_model) on concat([x_flat, t_embed]) ---
    h = (jnp.dot(x.astype(jnp.bfloat16), w1x_ref[...],
                 preferred_element_type=jnp.float32)
         + jnp.dot(te.astype(jnp.bfloat16), w1t_ref[...],
                   preferred_element_type=jnp.float32)
         + b1)
    h = _silu(h)                                # mlp[1]
    h = _layernorm_noaffine(h)                  # mlp[2] (gamma/beta folded into w2/b2)

    # --- mlp[3]: Linear(d_model, d_model) ---
    h = jnp.dot(h.astype(jnp.bfloat16), w2_ref[...],
                preferred_element_type=jnp.float32) + b2
    h = _silu(h)                                # mlp[4]
    h = _layernorm_noaffine(h)                  # mlp[5] (gamma/beta folded into w3/b3)

    # --- mlp[6]: Linear(d_model, d_out) (weight padded to 128 cols, store 8) ---
    o = jnp.dot(h.astype(jnp.bfloat16), w3_ref[...],
                preferred_element_type=jnp.float32)        # (TB, 128)
    out_ref[...] = (o[:, :OUT_W] + b3).astype(out_ref.dtype)


def _choose_tb(batch):
    """Largest sublane-aligned tile <= TB_MAX; keep >= 2 grid steps when possible
    so v7x's two TensorCores both get work."""
    b8 = max(8, ((batch + 7) // 8) * 8)
    tb = min(TB_MAX, b8)
    if b8 // tb < 2 and b8 >= 16:
        tb = max(8, (b8 // 2 // 8) * 8)
    return tb


def so3_diffusion_mlp(x_t, t, kp):
    """x_t: (B, 3, 3), t: (B,) -> (B, d_out). kp = prepare_kernel_params(...)."""
    B = x_t.shape[0]
    x_flat = x_t.reshape(B, 9).astype(jnp.float32)
    tcol = t.reshape(B, 1).astype(jnp.float32)

    tb = _choose_tb(B)
    Bp = ((B + tb - 1) // tb) * tb

    # pad batch to a multiple of tb; fold t into feature column 9
    xp = jnp.zeros((Bp, XPAD), jnp.float32)
    xp = xp.at[:B, :9].set(x_flat).at[:B, 9:10].set(tcol)

    grid = (Bp // tb,)
    bcast = lambda i: (0, 0)
    row = lambda i: (i, 0)

    out = pl.pallas_call(
        so3_mlp_kernel,
        out_shape=jax.ShapeDtypeStruct((Bp, OUT_W), jnp.float32),
        grid_spec=pltpu.PrefetchScalarGridSpec(
            num_scalar_prefetch=0,
            grid=grid,
            in_specs=[
                pl.BlockSpec((tb, XPAD), row),              # x (+t in col 9)
                pl.BlockSpec((8, D_MODEL), bcast),          # packed small vectors
                pl.BlockSpec((XPAD, D_MODEL), bcast),       # w1x  (bf16)
                pl.BlockSpec((D_MODEL, D_MODEL), bcast),    # w1t  (bf16)
                pl.BlockSpec((D_MODEL, D_MODEL), bcast),    # w2'  (bf16, LN1 folded)
                pl.BlockSpec((D_MODEL, D_MODEL), bcast),    # w3'  (bf16, LN2 folded, padded N)
            ],
            out_specs=pl.BlockSpec((tb, OUT_W), row),
        ),
        compiler_params=pltpu.CompilerParams(
            dimension_semantics=("parallel",)),
    )(xp, kp["vecs"], kp["w1x"], kp["w1t"], kp["w2"], kp["w3"])

    return out[:B, :D_OUT]


# ----------------------------------------------------------------------------
# Parameters: raw (PyTorch-equivalent, f32) and the kernel-packed form.
# ----------------------------------------------------------------------------
def init_params(key, d_model=D_MODEL, d_out=D_OUT):
    ks = jax.random.split(key, 12)
    s = 0.05
    wt = jax.random.normal(ks[0], (1, d_model), jnp.float32) * s   # Linear(1,d) weight.T
    bt = jax.random.normal(ks[1], (1, d_model), jnp.float32) * s
    w1 = jax.random.normal(ks[2], (9 + d_model, d_model), jnp.float32) * s
    b1 = jax.random.normal(ks[3], (1, d_model), jnp.float32) * s
    g1 = 1.0 + 0.1 * jax.random.normal(ks[4], (1, d_model), jnp.float32)
    be1 = 0.1 * jax.random.normal(ks[5], (1, d_model), jnp.float32)
    w2 = jax.random.normal(ks[6], (d_model, d_model), jnp.float32) * s
    b2 = jax.random.normal(ks[7], (1, d_model), jnp.float32) * s
    g2 = 1.0 + 0.1 * jax.random.normal(ks[8], (1, d_model), jnp.float32)
    be2 = 0.1 * jax.random.normal(ks[9], (1, d_model), jnp.float32)
    w3 = jax.random.normal(ks[10], (d_model, d_out), jnp.float32) * s
    b3 = jax.random.normal(ks[11], (1, d_out), jnp.float32) * s
    return dict(wt=wt, bt=bt, w1=w1, b1=b1, g1=g1, be1=be1,
                w2=w2, b2=b2, g2=g2, be2=be2, w3=w3, b3=b3)


def prepare_kernel_params(p, d_model=D_MODEL, d_out=D_OUT):
    """Wrapper-side precompute: split W1, fold LN affines into the next Linear,
    cast weight matrices to bf16, pack small vectors into one (8, d) block."""
    # split W1 into x-part (rows 0..8, padded to XPAD) and t_embed part
    w1x = jnp.zeros((XPAD, d_model), jnp.float32).at[:9].set(p["w1"][:9])
    w1t = p["w1"][9:]
    # fold LN1 (g1, be1) into Linear2
    w2f = p["w2"] * p["g1"].reshape(d_model, 1)
    b2f = p["be1"] @ p["w2"] + p["b2"]
    # fold LN2 (g2, be2) into Linear3; pad output cols to d_model for the MXU
    w3_sc = p["w3"] * p["g2"].reshape(d_model, 1)
    w3f = jnp.zeros((d_model, d_model), jnp.float32).at[:, :d_out].set(w3_sc)
    b3f = p["be2"] @ p["w3"] + p["b3"]                        # (1, d_out)
    # pack the (1, d_model) vectors into a single (8, d_model) f32 block
    vecs = jnp.zeros((8, d_model), jnp.float32)
    vecs = (vecs.at[0].set(p["wt"][0])
                .at[1].set(p["bt"][0])
                .at[2].set(p["b1"][0])
                .at[3].set(b2f[0])
                .at[4, :d_out].set(b3f[0]))
    return dict(vecs=vecs,
                w1x=w1x.astype(jnp.bfloat16),
                w1t=w1t.astype(jnp.bfloat16),
                w2=w2f.astype(jnp.bfloat16),
                w3=w3f.astype(jnp.bfloat16))


def reference_forward(x_t, t, p):
    """Pure-JAX f32 reference mirroring the PyTorch forward exactly."""
    B = x_t.shape[0]
    x = x_t.reshape(B, 9).astype(jnp.float32)
    t2 = t.reshape(B, 1).astype(jnp.float32)
    te = t2 @ p["wt"] + p["bt"]
    te = te * jax.nn.sigmoid(te)
    inp = jnp.concatenate([x, te], axis=1)
    h = inp @ p["w1"] + p["b1"]
    h = h * jax.nn.sigmoid(h)
    mu = h.mean(-1, keepdims=True); var = ((h - mu) ** 2).mean(-1, keepdims=True)
    h = (h - mu) / jnp.sqrt(var + LN_EPS) * p["g1"] + p["be1"]
    h = h @ p["w2"] + p["b2"]
    h = h * jax.nn.sigmoid(h)
    mu = h.mean(-1, keepdims=True); var = ((h - mu) ** 2).mean(-1, keepdims=True)
    h = (h - mu) / jnp.sqrt(var + LN_EPS) * p["g2"] + p["be2"]
    return h @ p["w3"] + p["b3"]


if __name__ == "__main__":
    key = jax.random.PRNGKey(0)
    kx, kt, kp = jax.random.split(key, 3)

    B = 12  # small, non-multiple-of-8 batch: exercises padding and a 2-step grid
    x_t = jax.random.normal(kx, (B, 3, 3), jnp.float32)   # rotation-matrix-like input
    t = jax.random.uniform(kt, (B,), jnp.float32)

    params = init_params(kp)
    kernel_params = prepare_kernel_params(params)

    out = jax.block_until_ready(so3_diffusion_mlp(x_t, t, kernel_params))

    ref = reference_forward(x_t, t, params)
    assert out.shape == (B, D_OUT)
    max_err = float(jnp.max(jnp.abs(out - ref)))
    # bf16 matmul operands (f32 accumulate) -> loose tolerance vs. the f32 reference
    assert max_err < 5e-2, f"mismatch vs reference: max abs err {max_err}"

    print("KERNEL_OK")
</pallas_src>

<mosaic_0001>
module attributes {stable_mosaic.version = 11 : i64} {
  func.func @so3_mlp_kernel(%arg0: i32, %arg1: memref<8x16xf32, #tpu.memory_space<vmem>>, %arg2: memref<8x128xf32, #tpu.memory_space<vmem>>, %arg3: memref<16x128xbf16, #tpu.memory_space<vmem>>, %arg4: memref<128x128xbf16, #tpu.memory_space<vmem>>, %arg5: memref<128x128xbf16, #tpu.memory_space<vmem>>, %arg6: memref<128x128xbf16, #tpu.memory_space<vmem>>, %arg7: memref<8x8xf32, #tpu.memory_space<vmem>>) attributes {dimension_semantics = [#tpu.dimension_semantics<parallel>], iteration_bounds = array<i64: 2>, scalar_prefetch = 0 : i64, scratch_operands = 0 : i64, tpu.core_type = #tpu.core_type<tc>, window_params = [{transform_indices = @transform_0, window_bounds = array<i64: 8, 16>}, {pipeline_mode = #tpu.pipeline_mode<synchronous>, transform_indices = @transform_1, window_bounds = array<i64: 8, 128>}, {pipeline_mode = #tpu.pipeline_mode<synchronous>, transform_indices = @transform_2, window_bounds = array<i64: 16, 128>}, {pipeline_mode = #tpu.pipeline_mode<synchronous>, transform_indices = @transform_3, window_bounds = array<i64: 128, 128>}, {pipeline_mode = #tpu.pipeline_mode<synchronous>, transform_indices = @transform_4, window_bounds = array<i64: 128, 128>}, {pipeline_mode = #tpu.pipeline_mode<synchronous>, transform_indices = @transform_5, window_bounds = array<i64: 128, 128>}, {transform_indices = @transform_6, window_bounds = array<i64: 8, 8>}]} {
    %c0 = arith.constant 0 : index
    %c0_0 = arith.constant 0 : index
    %0 = vector.load %arg1[%c0, %c0_0] : memref<8x16xf32, #tpu.memory_space<vmem>>, vector<8x16xf32>
    %c0_1 = arith.constant 0 : index
    %c0_2 = arith.constant 0 : index
    %1 = vector.load %arg2[%c0_1, %c0_2] : memref<8x128xf32, #tpu.memory_space<vmem>>, vector<8x128xf32>
    %2 = vector.extract_strided_slice %1 {offsets = [0, 0], sizes = [1, 128], strides = [1, 1]} : vector<8x128xf32> to vector<1x128xf32>
    %3 = vector.extract_strided_slice %1 {offsets = [1, 0], sizes = [1, 128], strides = [1, 1]} : vector<8x128xf32> to vector<1x128xf32>
    %4 = vector.extract_strided_slice %1 {offsets = [2, 0], sizes = [1, 128], strides = [1, 1]} : vector<8x128xf32> to vector<1x128xf32>
    %5 = vector.extract_strided_slice %1 {offsets = [3, 0], sizes = [1, 128], strides = [1, 1]} : vector<8x128xf32> to vector<1x128xf32>
    %6 = vector.extract_strided_slice %1 {offsets = [4, 0], sizes = [1, 8], strides = [1, 1]} : vector<8x128xf32> to vector<1x8xf32>
    %7 = vector.extract_strided_slice %0 {offsets = [0, 9], sizes = [8, 1], strides = [1, 1]} : vector<8x16xf32> to vector<8x1xf32>
    %8 = vector.broadcast %7 : vector<8x1xf32> to vector<8x128xf32>
    %9 = vector.broadcast %2 : vector<1x128xf32> to vector<8x128xf32>
    %10 = arith.mulf %8, %9 : vector<8x128xf32>
    %11 = vector.broadcast %3 : vector<1x128xf32> to vector<8x128xf32>
    %12 = arith.addf %10, %11 : vector<8x128xf32>
    %13 = arith.negf %12 : vector<8x128xf32>
    %14 = math.exp %13 : vector<8x128xf32>
    %cst = arith.constant 1.000000e+00 : f32
    %15 = vector.broadcast %cst : f32 to vector<8x128xf32>
    %16 = arith.addf %15, %14 : vector<8x128xf32>
    %17 = arith.divf %15, %16 : vector<8x128xf32>
    %18 = arith.mulf %12, %17 : vector<8x128xf32>
    %19 = arith.truncf %0 : vector<8x16xf32> to vector<8x16xbf16>
    %c0_3 = arith.constant 0 : index
    %c0_4 = arith.constant 0 : index
    %20 = vector.load %arg3[%c0_3, %c0_4] : memref<16x128xbf16, #tpu.memory_space<vmem>>, vector<16x128xbf16>
    %cst_5 = arith.constant dense<0.000000e+00> : vector<8x128xf32>
    %21 = tpu.matmul %19, %20, %cst_5 {dimension_numbers = #tpu.dot_dimension_numbers<[1], [0], [0], [1], [0, 0, 1, 1], [], []>} : vector<8x16xbf16>, vector<16x128xbf16>, vector<8x128xf32> -> vector<8x128xf32>
    %22 = arith.truncf %18 : vector<8x128xf32> to vector<8x128xbf16>
    %c0_6 = arith.constant 0 : index
    %c0_7 = arith.constant 0 : index
    %23 = vector.load %arg4[%c0_6, %c0_7] : memref<128x128xbf16, #tpu.memory_space<vmem>>, vector<128x128xbf16>
    %cst_8 = arith.constant dense<0.000000e+00> : vector<8x128xf32>
    %24 = tpu.matmul %22, %23, %cst_8 {dimension_numbers = #tpu.dot_dimension_numbers<[1], [0], [0], [1], [0, 0, 1, 1], [], []>} : vector<8x128xbf16>, vector<128x128xbf16>, vector<8x128xf32> -> vector<8x128xf32>
    %25 = arith.addf %21, %24 : vector<8x128xf32>
    %26 = vector.broadcast %4 : vector<1x128xf32> to vector<8x128xf32>
    %27 = arith.addf %25, %26 : vector<8x128xf32>
    %28 = arith.negf %27 : vector<8x128xf32>
    %29 = math.exp %28 : vector<8x128xf32>
    %cst_9 = arith.constant 1.000000e+00 : f32
    %30 = vector.broadcast %cst_9 : f32 to vector<8x128xf32>
    %31 = arith.addf %30, %29 : vector<8x128xf32>
    %32 = arith.divf %30, %31 : vector<8x128xf32>
    %33 = arith.mulf %27, %32 : vector<8x128xf32>
    %cst_10 = arith.constant dense<0.000000e+00> : vector<8xf32>
    %34 = vector.multi_reduction <add>, %33, %cst_10 [1] : vector<8x128xf32> to vector<8xf32>
    %35 = vector.shape_cast %34 : vector<8xf32> to vector<8x1xf32>
    %36 = arith.mulf %33, %33 : vector<8x128xf32>
    %cst_11 = arith.constant dense<0.000000e+00> : vector<8xf32>
    %37 = vector.multi_reduction <add>, %36, %cst_11 [1] : vector<8x128xf32> to vector<8xf32>
    %38 = vector.shape_cast %37 : vector<8xf32> to vector<8x1xf32>
    %cst_12 = arith.constant 7.812500e-03 : f32
    %39 = vector.broadcast %cst_12 : f32 to vector<8x1xf32>
    %40 = arith.mulf %35, %39 : vector<8x1xf32>
    %cst_13 = arith.constant 7.812500e-03 : f32
    %41 = vector.broadcast %cst_13 : f32 to vector<8x1xf32>
    %42 = arith.mulf %38, %41 : vector<8x1xf32>
    %43 = arith.mulf %40, %40 : vector<8x1xf32>
    %44 = arith.subf %42, %43 : vector<8x1xf32>
    %45 = vector.broadcast %40 : vector<8x1xf32> to vector<8x128xf32>
    %46 = arith.subf %33, %45 : vector<8x128xf32>
    %cst_14 = arith.constant 9.99999974E-6 : f32
    %47 = vector.broadcast %cst_14 : f32 to vector<8x1xf32>
    %48 = arith.addf %44, %47 : vector<8x1xf32>
    %49 = math.rsqrt %48 : vector<8x1xf32>
    %50 = vector.broadcast %49 : vector<8x1xf32> to vector<8x128xf32>
    %51 = arith.mulf %46, %50 : vector<8x128xf32>
    %52 = arith.truncf %51 : vector<8x128xf32> to vector<8x128xbf16>
    %c0_15 = arith.constant 0 : index
    %c0_16 = arith.constant 0 : index
    %53 = vector.load %arg5[%c0_15, %c0_16] : memref<128x128xbf16, #tpu.memory_space<vmem>>, vector<128x128xbf16>
    %cst_17 = arith.constant dense<0.000000e+00> : vector<8x128xf32>
    %54 = tpu.matmul %52, %53, %cst_17 {dimension_numbers = #tpu.dot_dimension_numbers<[1], [0], [0], [1], [0, 0, 1, 1], [], []>} : vector<8x128xbf16>, vector<128x128xbf16>, vector<8x128xf32> -> vector<8x128xf32>
    %55 = vector.broadcast %5 : vector<1x128xf32> to vector<8x128xf32>
    %56 = arith.addf %54, %55 : vector<8x128xf32>
    %57 = arith.negf %56 : vector<8x128xf32>
    %58 = math.exp %57 : vector<8x128xf32>
    %cst_18 = arith.constant 1.000000e+00 : f32
    %59 = vector.broadcast %cst_18 : f32 to vector<8x128xf32>
    %60 = arith.addf %59, %58 : vector<8x128xf32>
    %61 = arith.divf %59, %60 : vector<8x128xf32>
    %62 = arith.mulf %56, %61 : vector<8x128xf32>
    %cst_19 = arith.constant dense<0.000000e+00> : vector<8xf32>
    %63 = vector.multi_reduction <add>, %62, %cst_19 [1] : vector<8x128xf32> to vector<8xf32>
    %64 = vector.shape_cast %63 : vector<8xf32> to vector<8x1xf32>
    %65 = arith.mulf %62, %62 : vector<8x128xf32>
    %cst_20 = arith.constant dense<0.000000e+00> : vector<8xf32>
    %66 = vector.multi_reduction <add>, %65, %cst_20 [1] : vector<8x128xf32> to vector<8xf32>
    %67 = vector.shape_cast %66 : vector<8xf32> to vector<8x1xf32>
    %cst_21 = arith.constant 7.812500e-03 : f32
    %68 = vector.broadcast %cst_21 : f32 to vector<8x1xf32>
    %69 = arith.mulf %64, %68 : vector<8x1xf32>
    %cst_22 = arith.constant 7.812500e-03 : f32
    %70 = vector.broadcast %cst_22 : f32 to vector<8x1xf32>
    %71 = arith.mulf %67, %70 : vector<8x1xf32>
    %72 = arith.mulf %69, %69 : vector<8x1xf32>
    %73 = arith.subf %71, %72 : vector<8x1xf32>
    %74 = vector.broadcast %69 : vector<8x1xf32> to vector<8x128xf32>
    %75 = arith.subf %62, %74 : vector<8x128xf32>
    %cst_23 = arith.constant 9.99999974E-6 : f32
    %76 = vector.broadcast %cst_23 : f32 to vector<8x1xf32>
    %77 = arith.addf %73, %76 : vector<8x1xf32>
    %78 = math.rsqrt %77 : vector<8x1xf32>
    %79 = vector.broadcast %78 : vector<8x1xf32> to vector<8x128xf32>
    %80 = arith.mulf %75, %79 : vector<8x128xf32>
    %81 = arith.truncf %80 : vector<8x128xf32> to vector<8x128xbf16>
    %c0_24 = arith.constant 0 : index
    %c0_25 = arith.constant 0 : index
    %82 = vector.load %arg6[%c0_24, %c0_25] : memref<128x128xbf16, #tpu.memory_space<vmem>>, vector<128x128xbf16>
    %cst_26 = arith.constant dense<0.000000e+00> : vector<8x128xf32>
    %83 = tpu.matmul %81, %82, %cst_26 {dimension_numbers = #tpu.dot_dimension_numbers<[1], [0], [0], [1], [0, 0, 1, 1], [], []>} : vector<8x128xbf16>, vector<128x128xbf16>, vector<8x128xf32> -> vector<8x128xf32>
    %84 = vector.extract_strided_slice %83 {offsets = [0, 0], sizes = [8, 8], strides = [1, 1]} : vector<8x128xf32> to vector<8x8xf32>
    %85 = vector.broadcast %6 : vector<1x8xf32> to vector<8x8xf32>
    %86 = arith.addf %84, %85 : vector<8x8xf32>
    %c0_27 = arith.constant 0 : index
    %c0_28 = arith.constant 0 : index
    %87 = vector.load %arg7[%c0_27, %c0_28] : memref<8x8xf32, #tpu.memory_space<vmem>>, vector<8x8xf32>
    tpu.vector_store %arg7[%c0_27, %c0_28], %86 {strides = array<i32>} : memref<8x8xf32, #tpu.memory_space<vmem>>, vector<8x8xf32>,
    return
  }
  func.func @transform_0(%arg0: i32) -> (i32, i32) {
    %c0_i32 = arith.constant 0 : i32
    %c0_i32_0 = arith.constant 0 : i32
    return %arg0, %c0_i32 : i32, i32
  }
  func.func @transform_1(%arg0: i32) -> (i32, i32) {
    %c0_i32 = arith.constant 0 : i32
    %c0_i32_0 = arith.constant 0 : i32
    %c0_i32_1 = arith.constant 0 : i32
    return %c0_i32, %c0_i32_0 : i32, i32
  }
  func.func @transform_2(%arg0: i32) -> (i32, i32) {
    %c0_i32 = arith.constant 0 : i32
    %c0_i32_0 = arith.constant 0 : i32
    %c0_i32_1 = arith.constant 0 : i32
    return %c0_i32, %c0_i32_0 : i32, i32
  }
  func.func @transform_3(%arg0: i32) -> (i32, i32) {
    %c0_i32 = arith.constant 0 : i32
    %c0_i32_0 = arith.constant 0 : i32
    %c0_i32_1 = arith.constant 0 : i32
    return %c0_i32, %c0_i32_0 : i32, i32
  }
  func.func @transform_4(%arg0: i32) -> (i32, i32) {
    %c0_i32 = arith.constant 0 : i32
    %c0_i32_0 = arith.constant 0 : i32
    %c0_i32_1 = arith.constant 0 : i32
    return %c0_i32, %c0_i32_0 : i32, i32
  }
  func.func @transform_5(%arg0: i32) -> (i32, i32) {
    %c0_i32 = arith.constant 0 : i32
    %c0_i32_0 = arith.constant 0 : i32
    %c0_i32_1 = arith.constant 0 : i32
    return %c0_i32, %c0_i32_0 : i32, i32
  }
  func.func @transform_6(%arg0: i32) -> (i32, i32) {
    %c0_i32 = arith.constant 0 : i32
    %c0_i32_0 = arith.constant 0 : i32
    return %arg0, %c0_i32 : i32, i32
  }
}

</mosaic_0001>

<bundles_post_ra>
// kernel: tpu_custom_call.1
= control target key start
LH: loop header
LB: loop body
LE: loop exit
PB: predicated region body
PF: predicated region fallthrough
CT: control target
= control target key end

     0   :  { %11 = vsyncpa [#allocation3], 0  ;;  %s1523_s0 = inlined_call_operand.hbm [shape: f32[16,16], index: 0, kind: input, shape index: {}]   ;;  %s1524_s1 = inlined_call_operand.hbm [shape: f32[8,128], index: 1, kind: input, shape index: {}]   ;;  %s1525_s2 = inlined_call_operand.hbm [shape: bf16[16,128], index: 2, kind: input, shape index: {}]   ;;  %s1526_s3 = inlined_call_operand.hbm [shape: bf16[128,128], index: 3, kind: input, shape index: {}]   ;;  %s1527_s4 = inlined_call_operand.hbm [shape: bf16[128,128], index: 4, kind: input, shape index: {}]   ;;  %s1528_s5 = inlined_call_operand.hbm [shape: bf16[128,128], index: 5, kind: input, shape index: {}]   ;;  %s1529_s6 = inlined_call_operand.vmem [shape: f32[16,8], index: 6, kind: output, shape index: {}]  }
   0x1   :  { %13 = vsyncpa [#allocation3 + $0x1], 0 }
   0x2   :  { %14 = vsyncpa [#allocation5], 0 }
   0x3   :  { %15 = vsyncpa [#allocation8], 0 }
   0x4   :  { %16 = vsyncpa [#allocation11], 0  ;;  %s1376_s21 = smov 0   ;;  %s1378_s22 = smov 0  }
   0x5   :  { %s1380_s23 = smov 0   ;;  %s1382_s24 = smov 0  }
   0x6 LB: > { %s196_s27 = sshll.u32 %s1524_s1, 4  ;;  %s1400_s28 = sadd.s32 4294967295, %s1331_s24   ;;  %s1331_s24 = sphi %s1382_s24, %s1537_s24   ;;  %s1327_s23 = sphi %s1380_s23, %s1536_s23   ;;  %s1323_s22 = sphi %s1378_s22, %s1535_s22   ;;  %s1319_s21 = sphi %s1376_s21, %s1534_s21   ;;  %s197_s27 = int_to_ptr.hbm [resolvable:$true] %s196_s27 }
   0x7   : > { %p847_p0 = scmp.ge.s32.totalorder %s1331_s24, 1  ;;  %p43_p1 = scmp.eq.s32.totalorder %s1400_s28, 0 }
   0x8   : > { %p184_p2 = scmp.lt.s32.totalorder %s1331_s24, 3  ;;  %s1333_s30 = smov [#allocation4]  }
   0x9   : > { %s198_s7 = sshll.u32 %s1333_s30, 4  ;;  %s221_s10 = sshll.u32 %s1526_s3, 4  ;;  %s199_s7 = int_to_ptr.vmem [resolvable:$true] %s198_s7  ;;  %s222_s10 = int_to_ptr.hbm [resolvable:$true] %s221_s10 }
   0xa   : > { %p1405_p3 = pnand %p847_p0, %p184_p2  ;;  %s207_s14 = sshll.u32 %s1525_s2, 4  ;;  %s208_s14 = int_to_ptr.hbm [resolvable:$true] %s207_s14 }
   0xb   : > { %s1334_s15 = smov [#allocation7]   ;;  %s1335_s17 = smov 64  }
   0xc   : > { %p1017_p4 = pneg %p1405_p3  ;;  %s223_s16 = sshll.u32 %s1334_s15, 4  ;;  %s224_s16 = int_to_ptr.vmem [resolvable:$true] %s223_s16 }
   0xd   : > { %s1336_s18 = smov 4   ;;  %s235_s25 = sshll.u32 %s1527_s4, 4  ;;  %s236_s25 = int_to_ptr.hbm [resolvable:$true] %s235_s25 }
   0xe   : > { %p1416_p5 = pnand %p1017_p4, %p43_p1  ;;  %s1337_s26 = smov [#allocation6]  }
   0xf   : > { %s209_s30 = sshll.u32 %s1337_s26, 4  ;;  %s1339_s12 = smov [#allocation10]   ;;  %s210_s30 = int_to_ptr.vmem [resolvable:$true] %s209_s30 }
  0x10   : > { %1020 = dma.hbm_to_vmem [thread:$0]  (!%p1416_p5), %s197_s27, 128, %s199_s7, [#allocation5]  }
  0x11   : > { %1026 = dma.hbm_to_vmem [thread:$0]  (!%p1416_p5), %s222_s10, 1024, %s224_s16, [#allocation8], %s1335_s17, %s1335_s17, %s1336_s18  }
  0x12   : > { %1023 = dma.hbm_to_vmem [thread:$0]  (!%p1416_p5), %s208_s14, 128, %s210_s30, [#allocation5], %s1335_s17, %s1335_s17, %s1336_s18  }
  0x13   : > { %s1338_s27 = smov [#allocation9]   ;;  %s249_s10 = sshll.u32 %s1528_s5, 4  ;;  %s250_s10 = int_to_ptr.hbm [resolvable:$true] %s249_s10 }
  0x14   : > { %s237_s7 = sshll.u32 %s1338_s27, 4  ;;  %s251_s13 = sshll.u32 %s1339_s12, 4  ;;  %s238_s7 = int_to_ptr.vmem [resolvable:$true] %s237_s7  ;;  %s252_s13 = int_to_ptr.vmem [resolvable:$true] %s251_s13 }
  0x15   : > { %1029 = dma.hbm_to_vmem [thread:$0]  (!%p1416_p5), %s236_s25, 1024, %s238_s7, [#allocation8], %s1335_s17, %s1335_s17, %s1336_s18  }
  0x16   : > { %1032 = dma.hbm_to_vmem [thread:$0]  (!%p1416_p5), %s250_s10, 1024, %s252_s13, [#allocation11], %s1335_s17, %s1335_s17, %s1336_s18  }
  0x17   : > { %s1440_s14 = sadd.s32 1, %s1331_s24   ;;  %s29_s16 = sadd.s32 1, %s1327_s23 }
  0x18   : > { %s26_s15 = ssub.s32 %s1331_s24, %s1440_s14  ;;  %p36_p7 = scmp.ne.s32.totalorder %s1327_s23, %s1323_s22 }
  0x19   : > { %p27_p6 = scmp.eq.s32.totalorder %s26_s15, 0  ;;  %p37_p8 = scmp.eq.s32.totalorder %s1331_s24, 0 }
  0x1a   : > { %p42_p9 = scmp.ne.s32.totalorder %s1323_s22, %s1319_s21  ;;  %p1042_p12 = scmp.lt.s32.totalorder %s1331_s24, 2 }
  0x1b   : > { %s1451_s19 = scalar_select %p27_p6, %s1327_s23, %s29_s16  }
  0x1c   : > { %p38_p10 = por %p37_p8, %p36_p7  ;;  %p1455_p11 = por %p43_p1, %p42_p9 }
  0x1d   : > { %s265_s11 = sand.u32 1, %s1327_s23   ;;  %s855_s18 = sshll.u32 %s1331_s24, 3 }
  0x1e   : > { %s854_s17 = sshll.u32 %s265_s11, 3  ;;  %s273_s30 = scalar_lea.hbm %s1523_s0, %s855_s18 }
  0x1f   : > { %s269_s27 = scalar_lea.vmem [#allocation2], %s854_s17  ;;  %s275_s8 = sshll.u32 %s273_s30, 4  ;;  %s276_s8 = int_to_ptr.hbm [resolvable:$true] %s275_s8 }
  0x20   : > { %s277_s7 = sshll.u32 %s269_s27, 4  ;;  %p1465_p13 = pnand %p1042_p12, %p38_p10  ;;  %s278_s7 = int_to_ptr.vmem [resolvable:$true] %s277_s7 }
  0x21   : > { %s266_s9 = scalar_lea.sflag [#allocation3], %s265_s11  ;;  %s1255_s10 = sshra.s32 %s276_s8, 4  ;;  %s1256_s10 = int_to_ptr.hbm [resolvable:$true] %s1255_s10 }
  0x22   : > { %s1257_s12 = scalar_lea.hbm %s1256_s10, 8  ;;  %p1259_p2 = pneg %p1465_p13 }
  0x23   : > { %p1258_p0 = scmp.ne.s32.totalorder %s1256_s10, %s1257_s12  ;;  %s1262_s15 = scalar_lea.hbm %s1523_s0, 16 }
  0x24   : > { %p1263_p6 = scmp.lt.s32.totalorder %s1256_s10, %s1523_s0  ;;  %p1264_p7 = scmp.lt.s32.totalorder %s1262_s15, %s1257_s12 }
  0x25   : > { %p1260_p4 = pnand %p1259_p2, %p1258_p0 }
  0x26   : > { %p1265_p8 = por %p1264_p7, %p1263_p6 }
  0x27   : > { %p1261_p5 = pneg %p1260_p4 }
  0x29   : > { %p1266_p9 = pnand %p1265_p8, %p1261_p5 }
  0x2b   : > { %1269 = shalt.err (!%p1266_p9)
}
  0x2c   : > { %1036 = dma.hbm_to_vmem [thread:$0]  (!%p1465_p13), %s276_s8, 128, %s278_s7, %s266_s9  }
  0x2d   : > { %286 = sbr.rel (%p1405_p3) target bundleno = 966 (0x3c6), region = 44  ;;  %s288_s11 = sand.u32 (!%p1405_p3), 1, %s1323_s22  }
  0x2e   : > { %s857_s18 = sshll.u32 (!%p1405_p3), %s288_s11, 3  ;;  %s289_s25 = scalar_lea.sflag (!%p1405_p3), [#allocation3], %s288_s11 }
  0x2f   : > { %s292_s26 = scalar_lea.vmem (!%p1405_p3), [#allocation2], %s857_s18 }
  0x32   : > { %1302 = dma.done.wait (%p1455_p11), %s289_s25, 128  }
  0x33   : > { %1304 = vsyncadd (%p1455_p11), %s289_s25, 4294967168 }
  0x34   : > { %1306 = dma.done.wait (%p43_p1), [#allocation5], 256  }
  0x35   : > { %1308 = vsyncadd (%p43_p1), [#allocation5], 4294967040 }
  0x36   : > { %1310 = dma.done.wait (%p43_p1), [#allocation8], 2048  }
  0x37   : > { %1312 = vsyncadd (%p43_p1), [#allocation8], 4294965248 }
  0x38   : > { %1314 = dma.done.wait (%p43_p1), [#allocation11], 1024  }
  0x39   : > { %1316 = vsyncadd (%p43_p1), [#allocation11], 4294966272  ;;  %v1340_v0 = vmov 9   ;;  %v351_v1 = vld [vmem:[%s292_s26] sm:$0xff]  ;;  %v978_v2 = vld [vmem:[#allocation7 + $0x38] sm:$0xff]  ;;  %vm469_vm0 = vcmask 130048  }
  0x3a   : > { %1088 = vset.pattern.permute.xlu0 %v1340_v0  ;;  %450 = vmatpush.bf16.msra.mxu0 %v978_v2  ;;  %v977_v3 = vld [vmem:[#allocation7 + $0x30] sm:$0xff]  ;;  %v976_v4 = vld [vmem:[#allocation7 + $0x28] sm:$0xff]  ;;  %v975_v5 = vld [vmem:[#allocation7 + $0x20] sm:$0xff]  ;;  %v382_v7 = vpack.c.bf16 %v351_v1, %v351_v1  ;;  %p346_p1 = scmp.lt.s32.totalorder %s1400_s28, 1 }
  0x3b   : > { %355 = vperm.xlu0 %1088, %v351_v1   ;;  %v970_v6 = vld [vmem:[#allocation6] sm:$0xff]  ;;  %v973_v9 = vld [vmem:[#allocation7 + $0x10] sm:$0xff]  ;;  %v972_v11 = vld [vmem:[#allocation7 + $0x8] sm:$0xff] }
  0x3c   : > { %v974_v8 = vld [vmem:[#allocation7 + $0x18] sm:$0xff]  ;;  %480 = vmatpush.bf16.msra.mxu1 %v970_v6  ;;  %v1498_v10 = vld [vmem:[#allocation4] sm:$0xff]  ;;  %v971_v13 = vld [vmem:[#allocation7] sm:$0xff]  ;;  %s1539_s28 = smov (!%p346_p1, %s1400_s28), 1 }
  0x3d   : > { %v358_v12 = vperm.slane %v1498_v10, 0  ;;  %v360_v14 = vperm.slane %v1498_v10, 1  ;;  %v486_v35 = vperm.slane %v1498_v10, 2  ;;  %v986_v40 = vld [vmem:[#allocation9 + $0x38] sm:$0xff]  ;;  %v985_v56 = vld [vmem:[#allocation9 + $0x30] sm:$0xff]  ;;  %v984_v57 = vld [vmem:[#allocation9 + $0x28] sm:$0xff] }
  0x3e   : > { %451 = vmatpush.bf16.msra.mxu0 %v977_v3  ;;  %596 = vmatpush.bf16.msra.mxu2 %v986_v40  ;;  %v983_v58 = vld [vmem:[#allocation9 + $0x20] sm:$0xff]  ;;  %v982_v59 = vld [vmem:[#allocation9 + $0x18] sm:$0xff]  ;;  %v981_v60 = vld [vmem:[#allocation9 + $0x10] sm:$0xff]  ;;  %s863_s29 = sshll.u32 %s1539_s28, 3 }
  0x3f   : > { %901 = vmatmul.msk.bf16.vlgmr.msra.gmra.mxu1 %vm469_vm0, %v382_v7  ;;  %v980_v61 = vld [vmem:[#allocation9 + $0x8] sm:$0xff]  ;;  %v979_v62 = vld [vmem:[#allocation9] sm:$0xff]  ;;  %v990_v40 = vld [vmem:[#allocation10 + $0x18] sm:$0xff]  ;;  %s349_s27 = scalar_lea.vmem %s1529_s6, %s863_s29 }
  0x42   : > { %452 = vmatpush.bf16.msra.mxu0 %v976_v4  ;;  %597 = vmatpush.bf16.msra.mxu2 %v985_v56 }
  0x46   : > { %453 = vmatpush.bf16.msra.mxu0 %v975_v5  ;;  %598 = vmatpush.bf16.msra.mxu2 %v984_v57 }
  0x4a   : > { %454 = vmatpush.bf16.msra.mxu0 %v974_v8  ;;  %599 = vmatpush.bf16.msra.mxu2 %v983_v58 }
  0x4e   : > { %455 = vmatpush.bf16.msra.mxu0 %v973_v9  ;;  %600 = vmatpush.bf16.msra.mxu2 %v982_v59 }
  0x52   : > { %456 = vmatpush.bf16.msra.mxu0 %v972_v11  ;;  %601 = vmatpush.bf16.msra.mxu2 %v981_v60 }
  0x56   : > { %457 = vmatpush.bf16.msra.mxu0 %v971_v13  ;;  %602 = vmatpush.bf16.msra.mxu2 %v980_v61  ;;  %v729_v61 = vperm.slane %v1498_v10, 4 }
  0x5a   : > { %603 = vmatpush.bf16.msra.mxu2 %v979_v62 }
  0xad   : > { %v356_v15 = vpop.permute.xlu0 %355 }
  0xae   : > { %v359_v16 = vmul.f32 %v358_v12, %v356_v15 }
  0xb0   : > { %v361_v17 = vadd.f32 %v360_v14, %v359_v16 }
  0xb2   : > { %v864_v18 = vmul.f32 -1.442695, %v361_v17 }
  0xb4   : > { %1089 = vpow2.f32 %v864_v18 }
  0xba   : > { %v1090_v19 = vpop.eup %1089 }
  0xbb   : > { %v365_v20 = vadd.f32 1.0, %v1090_v19 }
  0xbc   : > { %v482_v33 = vpop.f32.mrf.mxu1 }
  0xbd   : > { %1091 = vrcp.f32 %v365_v20  ;;  %v377_v24 = vand.u32 2147483648, %v365_v20  ;;  %v375_v26 = vand.u32 2147483647, %v365_v20  ;;  %vm371_vm2 = vweird.f32 %v365_v20 }
  0xbf   : > { %v378_v28 = vor.u32 1.1754944e-38, %v377_v24  ;;  %vm376_vm4 = vcmp.eq.f32.partialorder %v375_v26, 8.507059e+37 }
  0xc3   : > { %v1092_v21 = vpop.eup %1091 }
  0xc4   : > { %v367_v22 = vmul.f32 %v1092_v21, %v365_v20  ;;  %vm372_vm1 = vweird.f32 %v1092_v21  ;;  %v484_v34 = vpop.f32.mrf.mxu1 }
  0xc5   : > { %vm373_vm3 = vmor %vm371_vm2, %vm372_vm1 }
  0xc6   : > { %v368_v23 = vsub.f32 1.0, %v367_v22 }
  0xc8   : > { %v369_v25 = vmul.f32 %v1092_v21, %v368_v23 }
  0xca   : > { %v370_v27 = vadd.f32 %v1092_v21, %v369_v25 }
  0xcc   : > { %v374_v29 = vsel %vm373_vm3, %v1092_v21, %v370_v27  ;;  %v994_v21 = vld [vmem:[#allocation10 + $0x38] sm:$0xff]  ;;  %vm731_vm3 = vcmask 64512  }
  0xcd   : > { %v379_v30 = vsel %vm376_vm4, %v378_v28, %v374_v29  ;;  %716 = vmatpush.bf16.msra.mxu3 %v994_v21 }
  0xce   : > { %v381_v31 = vmul.f32 %v379_v30, %v361_v17  ;;  %v547_v17 = vperm.slane %v1498_v10, 3 }
  0xd0   : > { %v385_v32 = vpack.c.bf16 %v381_v31, %v381_v31 }
  0xd2   : > { %458 = vmatmul.bf16.vlgmr.msra.gmra.mxu0 %v385_v32 }
 0x14f   : > { %v459_v36 = vpop.f32.mrf.mxu0 }
 0x150   : > { %v483_v37 = vadd.f32 %v482_v33, %v459_v36 }
 0x152   : > { %v487_v38 = vadd.f32 %v486_v35, %v483_v37  ;;  %v993_v37 = vld [vmem:[#allocation10 + $0x30] sm:$0xff] }
 0x153   : > { %717 = vmatpush.bf16.msra.mxu3 %v993_v37 }
 0x154   : > { %v902_v39 = vmul.f32 -1.442695, %v487_v38 }
 0x156   : > { %1093 = vpow2.f32 %v902_v39  ;;  %v991_v39 = vld [vmem:[#allocation10 + $0x20] sm:$0xff] }
 0x157   : > { %v461_v41 = vpop.f32.mrf.mxu0 }
 0x158   : > { %v989_v41 = vld [vmem:[#allocation10 + $0x10] sm:$0xff] }
 0x15c   : > { %v1094_v42 = vpop.eup %1093 }
 0x15d   : > { %v491_v43 = vadd.f32 1.0, %v1094_v42  ;;  %v988_v42 = vld [vmem:[#allocation10 + $0x8] sm:$0xff] }
 0x15f   : > { %1095 = vrcp.f32 %v491_v43  ;;  %v503_v47 = vand.u32 2147483648, %v491_v43  ;;  %v501_v49 = vand.u32 2147483647, %v491_v43  ;;  %vm497_vm6 = vweird.f32 %v491_v43 }
 0x161   : > { %v504_v51 = vor.u32 1.1754944e-38, %v503_v47  ;;  %vm502_vm8 = vcmp.eq.f32.partialorder %v501_v49, 8.507059e+37 }
 0x165   : > { %v1096_v44 = vpop.eup %1095 }
 0x166   : > { %v493_v45 = vmul.f32 %v1096_v44, %v491_v43  ;;  %vm498_vm5 = vweird.f32 %v1096_v44  ;;  %v987_v43 = vld [vmem:[#allocation10] sm:$0xff] }
 0x167   : > { %vm499_vm7 = vmor %vm497_vm6, %vm498_vm5 }
 0x168   : > { %v494_v46 = vsub.f32 1.0, %v493_v45 }
 0x16a   : > { %v495_v48 = vmul.f32 %v1096_v44, %v494_v46 }
 0x16c   : > { %v496_v50 = vadd.f32 %v1096_v44, %v495_v48 }
 0x16e   : > { %v500_v52 = vsel %vm499_vm7, %v1096_v44, %v496_v50 }
 0x16f   : > { %v505_v53 = vsel %vm502_vm8, %v504_v51, %v500_v52 }
 0x170   : > { %v507_v54 = vmul.f32 %v505_v53, %v487_v38  ;;  %v992_v38 = vld [vmem:[#allocation10 + $0x28] sm:$0xff] }
 0x171   : > { %718 = vmatpush.bf16.msra.mxu3 %v992_v38 }
 0x172   : > { %508 = vadd.xlane.f32.xlu0 %v507_v54  ;;  %v510_v55 = vmul.f32 %v507_v54, %v507_v54 }
 0x174   : > { %511 = vadd.xlane.f32.xlu1 %v510_v55 }
 0x175   : > { %719 = vmatpush.bf16.msra.mxu3 %v991_v39 }
 0x179   : > { %720 = vmatpush.bf16.msra.mxu3 %v990_v40 }
 0x17d   : > { %721 = vmatpush.bf16.msra.mxu3 %v989_v41 }
 0x181   : > { %722 = vmatpush.bf16.msra.mxu3 %v988_v42 }
 0x185   : > { %723 = vmatpush.bf16.msra.mxu3 %v987_v43 }
 0x1e5   : > { %v509_v63 = vpop.xlane.xlu0 %508 }
 0x1e6   : > { %v513_v0 = vmul.f32 0.0078125, %v509_v63 }
 0x1e7   : > { %v512_v1 = vpop.xlane.xlu1 %511 }
 0x1e8   : > { %v515_v2 = vmul.f32 %v513_v0, %v513_v0  ;;  %v514_v3 = vmul.f32 0.0078125, %v512_v1  ;;  %v517_v13 = vsub.f32 %v507_v54, %v513_v0 }
 0x1ea   : > { %v516_v4 = vsub.f32 %v514_v3, %v515_v2 }
 0x1ec   : > { %v518_v5 = vadd.f32 1e-05, %v516_v4 }
 0x1ee   : > { %1097 = vrsqrt.f32 %v518_v5  ;;  %vm525_vm10 = vweird.f32 %v518_v5 }
 0x1f4   : > { %v1098_v6 = vpop.eup %1097 }
 0x1f5   : > { %v520_v7 = vmul.f32 %v1098_v6, %v518_v5  ;;  %vm526_vm9 = vweird.f32 %v1098_v6 }
 0x1f6   : > { %vm527_vm11 = vmor %vm525_vm10, %vm526_vm9 }
 0x1f7   : > { %v521_v8 = vmul.f32 %v1098_v6, %v520_v7 }
 0x1f9   : > { %v522_v9 = vmul.f32 0.5, %v521_v8 }
 0x1fb   : > { %v523_v11 = vsub.f32 1.5, %v522_v9 }
 0x1fd   : > { %v524_v12 = vmul.f32 %v1098_v6, %v523_v11 }
 0x1ff   : > { %v528_v14 = vsel %vm527_vm11, %v1098_v6, %v524_v12 }
 0x200   : > { %v529_v15 = vmul.f32 %v528_v14, %v517_v13 }
 0x202   : > { %v530_v16 = vpack.c.bf16 %v529_v15, %v529_v15 }
 0x204   : > { %604 = vmatmul.bf16.vlgmr.msra.gmra.mxu2 %v530_v16 }
 0x287   : > { %v605_v18 = vpop.f32.mrf.mxu2 }
 0x288   : > { %v606_v19 = vadd.f32 %v605_v18, %v547_v17 }
 0x28a   : > { %v935_v20 = vmul.f32 -1.442695, %v606_v19 }
 0x28c   : > { %1099 = vpow2.f32 %v935_v20 }
 0x28f   : > { %v607_v22 = vpop.f32.mrf.mxu2 }
 0x292   : > { %v1100_v23 = vpop.eup %1099 }
 0x293   : > { %v612_v24 = vadd.f32 1.0, %v1100_v23 }
 0x295   : > { %1101 = vrcp.f32 %v612_v24  ;;  %v624_v28 = vand.u32 2147483648, %v612_v24  ;;  %v622_v30 = vand.u32 2147483647, %v612_v24  ;;  %vm618_vm13 = vweird.f32 %v612_v24 }
 0x297   : > { %v625_v32 = vor.u32 1.1754944e-38, %v624_v28  ;;  %vm623_vm15 = vcmp.eq.f32.partialorder %v622_v30, 8.507059e+37 }
 0x29b   : > { %v1102_v25 = vpop.eup %1101 }
 0x29c   : > { %v614_v26 = vmul.f32 %v1102_v25, %v612_v24  ;;  %vm619_vm12 = vweird.f32 %v1102_v25 }
 0x29d   : > { %vm620_vm14 = vmor %vm618_vm13, %vm619_vm12 }
 0x29e   : > { %v615_v27 = vsub.f32 1.0, %v614_v26 }
 0x2a0   : > { %v616_v29 = vmul.f32 %v1102_v25, %v615_v27 }
 0x2a2   : > { %v617_v31 = vadd.f32 %v1102_v25, %v616_v29 }
 0x2a4   : > { %v621_v33 = vsel %vm620_vm14, %v1102_v25, %v617_v31 }
 0x2a5   : > { %v626_v34 = vsel %vm623_vm15, %v625_v32, %v621_v33 }
 0x2a6   : > { %v628_v35 = vmul.f32 %v626_v34, %v606_v19 }
 0x2a8   : > { %629 = vadd.xlane.f32.xlu1 %v628_v35  ;;  %v631_v36 = vmul.f32 %v628_v35, %v628_v35 }
 0x2aa   : > { %632 = vadd.xlane.f32.xlu2 %v631_v36 }
 0x31b   : > { %v630_v44 = vpop.xlane.xlu1 %629 }
 0x31c   : > { %v634_v45 = vmul.f32 0.0078125, %v630_v44 }
 0x31d   : > { %v633_v46 = vpop.xlane.xlu2 %632 }
 0x31e   : > { %v636_v47 = vmul.f32 %v634_v45, %v634_v45  ;;  %v635_v48 = vmul.f32 0.0078125, %v633_v46  ;;  %v638_v57 = vsub.f32 %v628_v35, %v634_v45 }
 0x320   : > { %v637_v49 = vsub.f32 %v635_v48, %v636_v47 }
 0x322   : > { %v639_v50 = vadd.f32 1e-05, %v637_v49 }
 0x324   : > { %1103 = vrsqrt.f32 %v639_v50  ;;  %vm646_vm1 = vweird.f32 %v639_v50 }
 0x32a   : > { %v1104_v51 = vpop.eup %1103 }
 0x32b   : > { %v641_v52 = vmul.f32 %v1104_v51, %v639_v50  ;;  %vm647_vm0 = vweird.f32 %v1104_v51 }
 0x32c   : > { %vm648_vm2 = vmor %vm646_vm1, %vm647_vm0 }
 0x32d   : > { %v642_v53 = vmul.f32 %v1104_v51, %v641_v52 }
 0x32f   : > { %v643_v54 = vmul.f32 0.5, %v642_v53 }
 0x331   : > { %v644_v55 = vsub.f32 1.5, %v643_v54 }
 0x333   : > { %v645_v56 = vmul.f32 %v1104_v51, %v644_v55 }
 0x335   : > { %v649_v58 = vsel %vm648_vm2, %v1104_v51, %v645_v56 }
 0x336   : > { %v650_v59 = vmul.f32 %v649_v58, %v638_v57 }
 0x338   : > { %v651_v60 = vpack.c.bf16 %v650_v59, %v650_v59 }
 0x33a   : > { %724 = vmatmul.bf16.vlgmr.msra.gmra.mxu3 %v651_v60 }
 0x3bd   : > { %v725_v62 = vpop.f32.mrf.mxu3 }
 0x3be   : > { %v730_v63 = vadd.f32 %v729_v61, %v725_v62 }
 0x3c0   : > { %732 = vst.msk [vmem:[%s349_s27] sm:$0xff] %vm731_vm3, %v730_v63 }
 0x3c5   : > { %v727_v0 = vpop.f32.mrf.mxu3 }
 0x3c6 PF: > { %p19_p3 = scmp.ge.s32.totalorder %s1440_s14, 4   ;;  %s1534_s21 = smov %s1323_s22 }
 0x3c7   : > { %s1535_s22 = smov %s1327_s23  ;;  %s1536_s23 = smov %s1451_s19 }
 0x3c8   : > { %s1537_s24 = smov %s1440_s14  ;;  %21 = sbr.rel (!%p19_p3) target bundleno = 6 (0x6), region = 104 }
 0x3cd   :  { %752 = vsyncpa [#allocation3], 1 }
 0x3ce   :  { %754 = vsyncpa [#allocation3 + $0x1], 1 }
 0x3cf   :  { %755 = vsyncpa [#allocation5], 1 }
 0x3d0   :  { %756 = vsyncpa [#allocation8], 1 }
 0x3d1   :  { %757 = vsyncpa [#allocation11], 1 }

</bundles_post_ra>
